<compile_context>
chip_gen: v7x
topology: tpu7x:2x2x1
jax: 0.10.0
libtpu: 0.0.40
codegen_flags: <defaults>
</compile_context>

<pallas_src>
import jax
import jax.numpy as jnp
from jax.experimental import pallas as pl
from jax.experimental.pallas import tpu as pltpu

LANES = 128                      # vreg lane width
ACC_ROWS = 8                     # vreg sublane count -> (8, 128) accumulators
MAX_BLOCK_ROWS = 8192            # (8192, 128) f32 = 4 MiB per pipeline buffer
SUB_ROWS = 1024                  # accumulate in <=1024-row static slices
NUM_CORES = 2                    # v7x TensorCores; harmless (serial) elsewhere
VMEM_LIMIT_BYTES = 32 * 1024 * 1024


def _round_up(a, b):
    return ((a + b - 1) // b) * b


def _make_iou_kernel(block_rows, blocks_per_core, full_blocks, valid_rows, need_mask):
    """Builds the kernel body with all tiling decisions baked in statically."""
    # Static (start, size) row chunks; every size is a multiple of ACC_ROWS.
    chunks = []
    start = 0
    while start < block_rows:
        size = min(SUB_ROWS, block_rows - start)
        chunks.append((start, size))
        start += size

    def kernel(x_ref, y_ref, inter_ref, total_ref):
        core = pl.program_id(0)
        step = pl.program_id(1)

        @pl.when(step == 0)
        def _init():
            inter_ref[...] = jnp.zeros_like(inter_ref)
            total_ref[...] = jnp.zeros_like(total_ref)

        def accumulate(masked):
            if masked:
                g = core * blocks_per_core + step   # global (unclamped) block idx
            for s, sz in chunks:
                # Static ref slices: zero-cost views, upcast happens in VMEM.
                x = x_ref[s:s + sz, :].astype(jnp.float32)
                y = y_ref[s:s + sz, :].astype(jnp.float32)
                if masked:
                    # Zero out rows past the valid range (ragged tail of the
                    # last real block, or a fully-duplicated block from the
                    # odd-block-count core split).
                    row_ids = g * block_rows + s + jax.lax.broadcasted_iota(
                        jnp.int32, (sz, LANES), 0)
                    keep = row_ids < valid_rows
                    x = jnp.where(keep, x, 0.0)
                    y = jnp.where(keep, y, 0.0)
                # Pure VPU vreg adds into the resident (8,128) output blocks;
                # the reshape groups whole (8,128) tiles (relayout-free).
                inter_ref[...] += (x * y).reshape(-1, ACC_ROWS, LANES).sum(axis=0)
                total_ref[...] += (x + y).reshape(-1, ACC_ROWS, LANES).sum(axis=0)

        if need_mask:
            g = core * blocks_per_core + step

            @pl.when(g < full_blocks)        # fully-valid block: unmasked fast path
            def _fast():
                accumulate(False)

            @pl.when(g >= full_blocks)       # ragged / duplicated block: mask it
            def _masked():
                accumulate(True)
        else:
            accumulate(False)

    return kernel


def iou_loss(inputs, targets, smooth=1.0):
    x = jnp.ravel(inputs)    # keep native dtype in HBM; kernel upcasts in VMEM
    y = jnp.ravel(targets)
    n = x.shape[0]

    rows = pl.cdiv(n, LANES)
    if rows <= MAX_BLOCK_ROWS:
        # Small/medium input: round up to a sublane multiple so the single
        # block is (8k, 128)-shaped.  Copy is at most a few MiB.
        rows = _round_up(max(rows, ACC_ROWS), ACC_ROWS)
    padded_n = rows * LANES
    if padded_n != n:
        # Zero padding is neutral for both sums.
        x = jnp.pad(x, (0, padded_n - n))
        y = jnp.pad(y, (0, padded_n - n))
    x2 = x.reshape(rows, LANES)
    y2 = y.reshape(rows, LANES)

    block_rows = min(MAX_BLOCK_ROWS, rows)          # always a multiple of ACC_ROWS
    total_blocks = pl.cdiv(rows, block_rows)
    num_cores = min(NUM_CORES, total_blocks)        # shard blocks across TCs (v7x)
    blocks_per_core = pl.cdiv(total_blocks, num_cores)
    full_blocks = rows // block_rows                # blocks entirely inside `rows`
    need_mask = (num_cores * blocks_per_core) != full_blocks

    kernel = _make_iou_kernel(block_rows, blocks_per_core, full_blocks, rows, need_mask)

    def in_idx(c, i):
        # Clamp so any extra block from an odd split re-reads the last real
        # block; its contribution is masked to zero inside the kernel.
        return (jnp.minimum(c * blocks_per_core + i, total_blocks - 1), 0)

    def out_idx(c, i):
        # Per-core partials; same block across the reduction axis -> resident.
        return (c, 0)

    part_shape = jax.ShapeDtypeStruct((num_cores * ACC_ROWS, LANES), jnp.float32)

    inter_parts, total_parts = pl.pallas_call(
        kernel,
        out_shape=(part_shape, part_shape),
        grid_spec=pltpu.PrefetchScalarGridSpec(
            num_scalar_prefetch=0,
            grid=(num_cores, blocks_per_core),
            in_specs=[
                pl.BlockSpec((block_rows, LANES), in_idx),
                pl.BlockSpec((block_rows, LANES), in_idx),
            ],
            out_specs=[
                pl.BlockSpec((ACC_ROWS, LANES), out_idx),
                pl.BlockSpec((ACC_ROWS, LANES), out_idx),
            ],
        ),
        compiler_params=pltpu.CompilerParams(
            dimension_semantics=("parallel", "arbitrary"),
            vmem_limit_bytes=VMEM_LIMIT_BYTES,
        ),
    )(x2, y2)

    # Single cross-lane/sublane reduce on the tiny partials, outside the kernel.
    intersection = jnp.sum(inter_parts)
    total = jnp.sum(total_parts)
    union = total - intersection
    smooth = jnp.asarray(smooth, jnp.float32)
    return 1.0 - (intersection + smooth) / (union + smooth)


def _reference_iou_loss(inputs, targets, smooth=1.0):
    x = jnp.ravel(inputs).astype(jnp.float32)
    y = jnp.ravel(targets).astype(jnp.float32)
    intersection = jnp.sum(x * y)
    total = jnp.sum(x + y)
    union = total - intersection
    return 1.0 - (intersection + smooth) / (union + smooth)


if __name__ == "__main__":
    key = jax.random.PRNGKey(0)
    k1, k2, k3, k4 = jax.random.split(key, 4)

    # Typical module usage: sigmoid scores vs. binary mask (small shapes).
    inputs = jax.nn.sigmoid(jax.random.normal(k1, (2, 4, 16, 16), dtype=jnp.float32))
    targets = (jax.random.uniform(k2, (2, 4, 16, 16)) > 0.5).astype(jnp.float32)
    loss = jax.block_until_ready(iou_loss(inputs, targets, smooth=1.0))
    ref = _reference_iou_loss(inputs, targets, smooth=1.0)
    assert jnp.allclose(loss, ref, atol=1e-5, rtol=1e-5), (loss, ref)

    # Larger ragged case: exercises multi-block streaming, the 2-TensorCore
    # split, the lane pad, and the pl.when-gated ragged-tail mask.
    n_big = 2 * MAX_BLOCK_ROWS * LANES + 1000 * LANES + 53
    big_in = jax.nn.sigmoid(jax.random.normal(k3, (n_big,), dtype=jnp.float32))
    big_tg = (jax.random.uniform(k4, (n_big,)) > 0.5).astype(jnp.float32)
    loss_big = jax.block_until_ready(iou_loss(big_in, big_tg, smooth=1.0))
    ref_big = _reference_iou_loss(big_in, big_tg, smooth=1.0)
    assert jnp.allclose(loss_big, ref_big, atol=1e-4, rtol=1e-4), (loss_big, ref_big)

    print("KERNEL_OK")
</pallas_src>

<mosaic_0001>
module attributes {stable_mosaic.version = 11 : i64} {
  func.func @kernel(%arg0: i32, %arg1: i32, %arg2: memref<16x128xf32, #tpu.memory_space<vmem>>, %arg3: memref<16x128xf32, #tpu.memory_space<vmem>>, %arg4: memref<8x128xf32, #tpu.memory_space<vmem>>, %arg5: memref<8x128xf32, #tpu.memory_space<vmem>>) attributes {dimension_semantics = [#tpu.dimension_semantics<parallel>, #tpu.dimension_semantics<arbitrary>], iteration_bounds = array<i64: 1, 1>, scalar_prefetch = 0 : i64, scratch_operands = 0 : i64, tpu.core_type = #tpu.core_type<tc>, window_params = [{transform_indices = @transform_0, window_bounds = array<i64: 16, 128>}, {transform_indices = @transform_1, window_bounds = array<i64: 16, 128>}, {transform_indices = @transform_2, window_bounds = array<i64: 8, 128>}, {transform_indices = @transform_3, window_bounds = array<i64: 8, 128>}]} {
    %c0_i32 = arith.constant 0 : i32
    %0 = arith.cmpi eq, %arg1, %c0_i32 : i32
    %1 = arith.extui %0 : i1 to i32
    %c0_i32_0 = arith.constant 0 : i32
    %2 = arith.cmpi ne, %1, %c0_i32_0 : i32
    scf.if %2 {
      %cst_13 = arith.constant 0.000000e+00 : f32
      %17 = vector.broadcast %cst_13 : f32 to vector<8x128xf32>
      %c0_14 = arith.constant 0 : index
      %c0_15 = arith.constant 0 : index
      %18 = vector.load %arg4[%c0_14, %c0_15] : memref<8x128xf32, #tpu.memory_space<vmem>>, vector<8x128xf32>
      tpu.vector_store %arg4[%c0_14, %c0_15], %17 {strides = array<i32>} : memref<8x128xf32, #tpu.memory_space<vmem>>, vector<8x128xf32>,
      %cst_16 = arith.constant 0.000000e+00 : f32
      %19 = vector.broadcast %cst_16 : f32 to vector<8x128xf32>
      %c0_17 = arith.constant 0 : index
      %c0_18 = arith.constant 0 : index
      %20 = vector.load %arg5[%c0_17, %c0_18] : memref<8x128xf32, #tpu.memory_space<vmem>>, vector<8x128xf32>
      tpu.vector_store %arg5[%c0_17, %c0_18], %19 {strides = array<i32>} : memref<8x128xf32, #tpu.memory_space<vmem>>, vector<8x128xf32>,
    } else {
    }
    %c0 = arith.constant 0 : index
    %c0_1 = arith.constant 0 : index
    %3 = vector.load %arg2[%c0, %c0_1] : memref<16x128xf32, #tpu.memory_space<vmem>>, vector<16x128xf32>
    %c0_2 = arith.constant 0 : index
    %c0_3 = arith.constant 0 : index
    %4 = vector.load %arg3[%c0_2, %c0_3] : memref<16x128xf32, #tpu.memory_space<vmem>>, vector<16x128xf32>
    %c0_4 = arith.constant 0 : index
    %c0_5 = arith.constant 0 : index
    %5 = vector.load %arg4[%c0_4, %c0_5] : memref<8x128xf32, #tpu.memory_space<vmem>>, vector<8x128xf32>
    %6 = arith.mulf %3, %4 : vector<16x128xf32>
    %7 = vector.shape_cast %6 : vector<16x128xf32> to vector<2x8x128xf32>
    %cst = arith.constant dense<0.000000e+00> : vector<8x128xf32>
    %8 = vector.multi_reduction <add>, %7, %cst [0] : vector<2x8x128xf32> to vector<8x128xf32>
    %9 = arith.addf %5, %8 : vector<8x128xf32>
    %c0_6 = arith.constant 0 : index
    %c0_7 = arith.constant 0 : index
    %10 = vector.load %arg4[%c0_6, %c0_7] : memref<8x128xf32, #tpu.memory_space<vmem>>, vector<8x128xf32>
    tpu.vector_store %arg4[%c0_6, %c0_7], %9 {strides = array<i32>} : memref<8x128xf32, #tpu.memory_space<vmem>>, vector<8x128xf32>,
    %c0_8 = arith.constant 0 : index
    %c0_9 = arith.constant 0 : index
    %11 = vector.load %arg5[%c0_8, %c0_9] : memref<8x128xf32, #tpu.memory_space<vmem>>, vector<8x128xf32>
    %12 = arith.addf %3, %4 : vector<16x128xf32>
    %13 = vector.shape_cast %12 : vector<16x128xf32> to vector<2x8x128xf32>
    %cst_10 = arith.constant dense<0.000000e+00> : vector<8x128xf32>
    %14 = vector.multi_reduction <add>, %13, %cst_10 [0] : vector<2x8x128xf32> to vector<8x128xf32>
    %15 = arith.addf %11, %14 : vector<8x128xf32>
    %c0_11 = arith.constant 0 : index
    %c0_12 = arith.constant 0 : index
    %16 = vector.load %arg5[%c0_11, %c0_12] : memref<8x128xf32, #tpu.memory_space<vmem>>, vector<8x128xf32>
    tpu.vector_store %arg5[%c0_11, %c0_12], %15 {strides = array<i32>} : memref<8x128xf32, #tpu.memory_space<vmem>>, vector<8x128xf32>,
    return
  }
  func.func @transform_0(%arg0: i32, %arg1: i32) -> (i32, i32) {
    %c1_i32 = arith.constant 1 : i32
    %0 = arith.muli %arg0, %c1_i32 : i32
    %1 = arith.addi %0, %arg1 : i32
    %c0_i32 = arith.constant 0 : i32
    %2 = arith.minsi %1, %c0_i32 : i32
    %c0_i32_0 = arith.constant 0 : i32
    %c0_i32_1 = arith.constant 0 : i32
    return %2, %c0_i32_0 : i32, i32
  }
  func.func @transform_1(%arg0: i32, %arg1: i32) -> (i32, i32) {
    %c1_i32 = arith.constant 1 : i32
    %0 = arith.muli %arg0, %c1_i32 : i32
    %1 = arith.addi %0, %arg1 : i32
    %c0_i32 = arith.constant 0 : i32
    %2 = arith.minsi %1, %c0_i32 : i32
    %c0_i32_0 = arith.constant 0 : i32
    %c0_i32_1 = arith.constant 0 : i32
    return %2, %c0_i32_0 : i32, i32
  }
  func.func @transform_2(%arg0: i32, %arg1: i32) -> (i32, i32) {
    %c0_i32 = arith.constant 0 : i32
    %c0_i32_0 = arith.constant 0 : i32
    return %arg0, %c0_i32 : i32, i32
  }
  func.func @transform_3(%arg0: i32, %arg1: i32) -> (i32, i32) {
    %c0_i32 = arith.constant 0 : i32
    %c0_i32_0 = arith.constant 0 : i32
    return %arg0, %c0_i32 : i32, i32
  }
}

</mosaic_0001>

<bundles_post_ra>
// kernel: tpu_custom_call.1
= control target key start
LH: loop header
LB: loop body
LE: loop exit
PB: predicated region body
PF: predicated region fallthrough
CT: control target
= control target key end

     0   :  { %9 = vsyncpa [#allocation3], 0  ;;  %s296_s0 = inlined_call_operand.hbm [shape: f32[16,128], index: 0, kind: input, shape index: {}]   ;;  %s297_s1 = inlined_call_operand.hbm [shape: f32[16,128], index: 1, kind: input, shape index: {}]   ;;  %s298_s2 = inlined_call_operand.hbm [shape: f32[8,128], index: 2, kind: output, shape index: {0}]   ;;  %s299_s3 = inlined_call_operand.hbm [shape: f32[8,128], index: 3, kind: output, shape index: {1}]  }
   0x1   :  { %10 = vsyncpa [#allocation6], 0 }
   0x2   :  { %11 = vsyncpa [#allocation4], 0 }
   0x3   :  { %12 = vsyncpa [#allocation9], 0  ;;  %s222_s12 = smov [#allocation2]   ;;  %s126_s16 = scalar_lea.hbm %s296_s0, 256 }
   0x4   :  { %s24_s13 = sshll.u32 %s222_s12, 4  ;;  %p127_p0 = scmp.ne.s32.totalorder %s296_s0, %s126_s16  ;;  %s25_s13 = int_to_ptr.vmem [resolvable:$true] %s24_s13 }
   0x5   :  { %p130_p1 = scmp.lt.u32.totalorder %s126_s16, %s296_s0 }
   0x7   :  { %p132_p2 = pnand %p130_p1, %p127_p0 }
   0x9   :  { %135 = shalt.err (!%p132_p2)
}
   0xa   :  { %s136_s21 = scalar_lea.vmem %s25_s13, 256  ;;  %p141_p4 = scmp.lt.s32.totalorder %s25_s13, %s25_s13 }
   0xb   :  { %p137_p3 = scmp.ne.s32.totalorder %s25_s13, %s136_s21  ;;  %p142_p5 = scmp.lt.s32.totalorder %s136_s21, %s136_s21 }
   0xd   :  { %p143_p6 = por %p142_p5, %p141_p4 }
   0xf   :  { %p144_p7 = pnand %p143_p6, %p137_p3 }
  0x11   :  { %147 = shalt.err (!%p144_p7)
}
  0x12   :  { %s223_s22 = smov 128   ;;  %s224_s23 = smov 8  }
  0x13   :  { %30 = dma.hbm_to_vmem [thread:$0]  %s296_s0, 256, %s25_s13, [#allocation3], %s223_s22, %s223_s22, %s224_s23  }
  0x14   :  { %s225_s26 = smov [#allocation5]   ;;  %s148_s30 = scalar_lea.hbm %s297_s1, 256 }
  0x15   :  { %s42_s27 = sshll.u32 %s225_s26, 4  ;;  %p149_p8 = scmp.ne.s32.totalorder %s297_s1, %s148_s30  ;;  %s43_s27 = int_to_ptr.vmem [resolvable:$true] %s42_s27 }
  0x16   :  { %p152_p9 = scmp.lt.u32.totalorder %s148_s30, %s297_s1 }
  0x18   :  { %p154_p10 = pnand %p152_p9, %p149_p8 }
  0x1a   :  { %157 = shalt.err (!%p154_p10)
}
  0x1b   :  { %s158_s8 = scalar_lea.vmem %s43_s27, 256  ;;  %p163_p12 = scmp.lt.s32.totalorder %s43_s27, %s43_s27 }
  0x1c   :  { %p159_p11 = scmp.ne.s32.totalorder %s43_s27, %s158_s8  ;;  %p164_p13 = scmp.lt.s32.totalorder %s158_s8, %s158_s8 }
  0x1e   :  { %p165_p0 = por %p164_p13, %p163_p12 }
  0x20   :  { %p166_p1 = pnand %p165_p0, %p159_p11 }
  0x22   :  { %169 = shalt.err (!%p166_p1)
}
  0x23   :  { %48 = dma.hbm_to_vmem [thread:$0]  %s297_s1, 256, %s43_s27, [#allocation6], %s223_s22, %s223_s22, %s224_s23  }
  0x24   :  { %214 = dma.done.wait [#allocation3], 256  }
  0x25   :  { %215 = vsyncadd [#allocation3], 4294967040 }
  0x26   :  { %216 = dma.done.wait [#allocation6], 256  }
  0x27   :  { %217 = vsyncadd [#allocation6], 4294967040  ;;  %v69_v0 = vld [vmem:[#allocation2] sm:$0xff]  ;;  %v70_v1 = vld [vmem:[#allocation2 + $0x8] sm:$0xff]  ;;  %s226_s10 = smov [#allocation7]   ;;  %s227_s12 = smov [#allocation8]  }
  0x28   :  { %v71_v2 = vld [vmem:[#allocation5] sm:$0xff]  ;;  %v72_v3 = vld [vmem:[#allocation5 + $0x8] sm:$0xff]  ;;  %s91_s11 = sshll.u32 %s226_s10, 4  ;;  %s101_s13 = sshll.u32 %s227_s12, 4  ;;  %s92_s11 = int_to_ptr.vmem [resolvable:$true] %s91_s11  ;;  %s102_s13 = int_to_ptr.vmem [resolvable:$true] %s101_s13 }
  0x29   :  { %v74_v4 = vmul.f32 %v71_v2, %v69_v0  ;;  %v80_v5 = vadd.f32 %v71_v2, %v69_v0  ;;  %v75_v6 = vmul.f32 %v72_v3, %v70_v1  ;;  %v81_v7 = vadd.f32 %v72_v3, %v70_v1  ;;  %s170_s1 = scalar_lea.vmem %s92_s11, 128  ;;  %p175_p3 = scmp.lt.s32.totalorder %s92_s11, %s92_s11 }
  0x2a   :  { %p171_p2 = scmp.ne.s32.totalorder %s92_s11, %s170_s1  ;;  %p176_p4 = scmp.lt.s32.totalorder %s170_s1, %s170_s1 }
  0x2b   :  { %v76_v8 = vadd.f32 %v75_v6, %v74_v4  ;;  %v82_v9 = vadd.f32 %v81_v7, %v80_v5 }
  0x2c   :  { %p177_p5 = por %p176_p4, %p175_p3 }
  0x2d   :  { %78 = vst [vmem:[#allocation7] sm:$0xff] %v76_v8  ;;  %84 = vst [vmem:[#allocation8] sm:$0xff] %v82_v9 }
  0x2e   :  { %p178_p6 = pnand %p177_p5, %p171_p2 }
  0x30   :  { %181 = shalt.err (!%p178_p6)
}
  0x31   :  { %s182_s16 = scalar_lea.hbm %s298_s2, 128 }
  0x32   :  { %p183_p7 = scmp.ne.s32.totalorder %s298_s2, %s182_s16  ;;  %p186_p8 = scmp.lt.u32.totalorder %s182_s16, %s298_s2 }
  0x34   :  { %p188_p9 = pnand %p186_p8, %p183_p7 }
  0x36   :  { %191 = shalt.err (!%p188_p9)
}
  0x37   :  { %94 = dma.vmem_to_hbm [thread:$0]  %s92_s11, 128, %s298_s2, [#allocation4]  }
  0x38   :  { %s192_s23 = scalar_lea.vmem %s102_s13, 128  ;;  %p197_p11 = scmp.lt.s32.totalorder %s102_s13, %s102_s13 }
  0x39   :  { %p193_p10 = scmp.ne.s32.totalorder %s102_s13, %s192_s23  ;;  %p198_p12 = scmp.lt.s32.totalorder %s192_s23, %s192_s23 }
  0x3b   :  { %p199_p13 = por %p198_p12, %p197_p11 }
  0x3d   :  { %p200_p0 = pnand %p199_p13, %p193_p10 }
  0x3f   :  { %203 = shalt.err (!%p200_p0)
}
  0x40   :  { %s204_s26 = scalar_lea.hbm %s299_s3, 128 }
  0x41   :  { %p205_p1 = scmp.ne.s32.totalorder %s299_s3, %s204_s26  ;;  %p208_p2 = scmp.lt.u32.totalorder %s204_s26, %s299_s3 }
  0x43   :  { %p210_p3 = pnand %p208_p2, %p205_p1 }
  0x45   :  { %213 = shalt.err (!%p210_p3)
}
  0x46   :  { %104 = dma.vmem_to_hbm [thread:$0]  %s102_s13, 128, %s299_s3, [#allocation9]  }
  0x47   :  { %218 = dma.done.wait [#allocation4], 128  }
  0x48   :  { %219 = vsyncadd [#allocation4], 4294967168 }
  0x49   :  { %220 = dma.done.wait [#allocation9], 128  }
  0x4a   :  { %221 = vsyncadd [#allocation9], 4294967168 }
  0x4b   :  { %111 = vsyncpa [#allocation3], 1 }
  0x4c   :  { %112 = vsyncpa [#allocation6], 1 }
  0x4d   :  { %113 = vsyncpa [#allocation4], 1 }
  0x4e   :  { %114 = vsyncpa [#allocation9], 1 }

</bundles_post_ra>
